<compile_context>
chip_gen: v7x
topology: tpu7x:2x2x1
jax: 0.10.0
libtpu: 0.0.40
codegen_flags: <defaults>
</compile_context>

<pallas_src>
import functools
import math

import jax
import jax.numpy as jnp
from jax.experimental import pallas as pl
from jax.experimental.pallas import tpu as pltpu


# Packed output column layout (lane-dense (S*B, 128) slab).
_COL_L0, _COL_L1, _COL_P0, _COL_P1, _COL_CHOSEN, _COL_MASK, _COL_MASKED = range(7)
_PACK_W = 128


def _rre_kernel(greedy, mask_token, S, B,
                x_ref, u_ref, tbl_ref, whh_ref, bias_ref, wout_ref, bout_ref,
                out_ref, hall_scr):
    SB = x_ref.shape[0]
    V = tbl_ref.shape[0]
    H = whh_ref.shape[0]

    # ---- embedding + input-gate projection for ALL (t, b) rows: one matmul ----
    x_flat = x_ref[...]                                              # (SB, 1) int32
    vocab_iota = jax.lax.broadcasted_iota(jnp.int32, (SB, V), 1)
    onehot = (x_flat == vocab_iota).astype(jnp.float32)              # (SB, V)
    gin_all = (jnp.dot(onehot, tbl_ref[...],
                       preferred_element_type=jnp.float32)
               + bias_ref[...])                                      # (SB, 4H)

    # ---- LSTM recurrence (PyTorch gate order i, f, g, o); h/c live in vregs ----
    whh = whh_ref[...]                                               # (H, 4H)
    h = jnp.zeros((B, H), jnp.float32)
    c = jnp.zeros((B, H), jnp.float32)
    for t in range(S):                       # S is static -> fully unrolled
        gates = gin_all[t * B:(t + 1) * B, :] + jnp.dot(
            h, whh, preferred_element_type=jnp.float32)              # (B, 4H)
        sg = jax.nn.sigmoid(gates)           # one full-tile EUP pass
        th = jnp.tanh(gates)                 # one full-tile EUP pass
        i_g = sg[:, 0 * H:1 * H]
        f_g = sg[:, 1 * H:2 * H]
        g_g = th[:, 2 * H:3 * H]
        o_g = sg[:, 3 * H:4 * H]
        c = f_g * c + i_g * g_g
        h = o_g * jnp.tanh(c)
        hall_scr[pl.ds(t * B, B), :] = h     # only per-step VMEM write

    # ---- output projection + 2-class softmax via sigmoid of logit diff ----
    h_all = hall_scr[...]                                            # (SB, H)
    logits = (jnp.dot(h_all, wout_ref[...],
                      preferred_element_type=jnp.float32)
              + bout_ref[...])                                       # (SB, 2)
    l0 = logits[:, 0:1]
    l1 = logits[:, 1:2]
    p1 = jax.nn.sigmoid(l1 - l0)             # == softmax(logits)[..., 1]
    p0 = 1.0 - p1

    # ---- mask: argmax (greedy) or Bernoulli(p1) == multinomial over {p0,p1} ----
    if greedy:
        mask_b = l1 > l0
    else:
        # TODO(synk): torch.multinomial's exact RNG stream is not reproducible;
        # a distributionally-equivalent Bernoulli(p1) draw (u ~ U[0,1) from the
        # wrapper) is used instead.
        mask_b = u_ref[...] < p1
    mask_f = mask_b.astype(jnp.float32)
    chosen = jnp.where(mask_b, p1, p0)       # gather(policy, -1, mask)
    masked_f = (x_flat.astype(jnp.float32) * mask_f
                + (1.0 - mask_f) * float(mask_token))

    # ---- single lane-dense (SB, 128) store (full-lane vst) ----
    lane = jax.lax.broadcasted_iota(jnp.int32, (SB, _PACK_W), 1)
    packed = jnp.where(lane == _COL_L0, l0, 0.0)
    packed = jnp.where(lane == _COL_L1, l1, packed)
    packed = jnp.where(lane == _COL_P0, p0, packed)
    packed = jnp.where(lane == _COL_P1, p1, packed)
    packed = jnp.where(lane == _COL_CHOSEN, chosen, packed)
    packed = jnp.where(lane == _COL_MASK, mask_f, packed)
    packed = jnp.where(lane == _COL_MASKED, masked_f, packed)
    out_ref[...] = packed


@functools.partial(jax.jit, static_argnames=("greedy", "mask_token"))
def reinforce_rational_extractor(x, params, seed, *, greedy=False, mask_token=0):
    S, B = x.shape
    E = params["embedding"].shape[1]
    H = E
    SB = S * B

    x_flat = x.reshape(SB, 1).astype(jnp.int32)
    # One uniform per (t, b) row, drawn outside the kernel (deterministic in seed).
    u = jax.random.uniform(jax.random.PRNGKey(seed), (SB, 1), jnp.float32)

    # Fused (vocab, 4H) table: embedding lookup followed by the LSTM input
    # projection, pre-multiplied in the wrapper so the kernel sees it once.
    gate_table = jnp.dot(params["embedding"], params["w_ih"].T,
                         precision=jax.lax.Precision.HIGHEST)        # (V, 4H)
    whh_t = params["w_hh"].T                                         # (H, 4H)
    bias = (params["b_ih"] + params["b_hh"]).reshape(1, 4 * H)
    wout_t = params["w_out"].T                                       # (H, 2)
    bout = params["b_out"].reshape(1, 2)

    kernel = functools.partial(_rre_kernel, bool(greedy), int(mask_token), S, B)
    packed = pl.pallas_call(
        kernel,
        out_shape=jax.ShapeDtypeStruct((SB, _PACK_W), jnp.float32),
        in_specs=[pl.BlockSpec(memory_space=pltpu.MemorySpace.VMEM)] * 7,
        out_specs=pl.BlockSpec(memory_space=pltpu.MemorySpace.VMEM),
        scratch_shapes=[pltpu.VMEM((SB, H), jnp.float32)],   # all hidden states
    )(x_flat, u, gate_table, whh_t, bias, wout_t, bout)

    logits = packed[:, _COL_L0:_COL_L1 + 1].reshape(S, B, 2)
    policy = packed[:, _COL_P0:_COL_P1 + 1].reshape(S, B, 2)
    chosen = packed[:, _COL_CHOSEN:_COL_CHOSEN + 1].reshape(S, B, 1)
    mask = (packed[:, _COL_MASK] > 0.5).reshape(S, B)
    masked = jnp.round(packed[:, _COL_MASKED]).astype(jnp.int32).reshape(S, B)
    return {
        "mask_logits": logits,
        "policy": policy,
        "chosen_policy": chosen,
        "mask": mask,
        "masked_input": masked,
    }


def init_params(key, embedding_input=11, embedding_size=32):
    H = embedding_size
    k_e, k1, k2, k3, k4, k5, k6 = jax.random.split(key, 7)
    bound = 1.0 / math.sqrt(H)
    return {
        "embedding": jax.random.normal(k_e, (embedding_input, embedding_size), jnp.float32),
        "w_ih": jax.random.uniform(k1, (4 * H, embedding_size), jnp.float32, -bound, bound),
        "w_hh": jax.random.uniform(k2, (4 * H, H), jnp.float32, -bound, bound),
        "b_ih": jax.random.uniform(k3, (4 * H,), jnp.float32, -bound, bound),
        "b_hh": jax.random.uniform(k4, (4 * H,), jnp.float32, -bound, bound),
        "w_out": jax.random.uniform(k5, (2, H), jnp.float32, -bound, bound),
        "b_out": jax.random.uniform(k6, (2,), jnp.float32, -bound, bound),
    }


def _reference_logits_policy(x, params):
    """Pure-JAX replica of the PyTorch forward (embedding -> LSTM -> linear -> softmax)."""
    S, B = x.shape
    H = params["embedding"].shape[1]
    e = params["embedding"][x]                                   # (S, B, H)
    b = params["b_ih"] + params["b_hh"]
    h = jnp.zeros((B, H), jnp.float32)
    c = jnp.zeros((B, H), jnp.float32)
    hs = []
    for t in range(S):
        g = e[t] @ params["w_ih"].T + h @ params["w_hh"].T + b   # (B, 4H)
        i_g = jax.nn.sigmoid(g[:, 0 * H:1 * H])
        f_g = jax.nn.sigmoid(g[:, 1 * H:2 * H])
        g_g = jnp.tanh(g[:, 2 * H:3 * H])
        o_g = jax.nn.sigmoid(g[:, 3 * H:4 * H])
        c = f_g * c + i_g * g_g
        h = o_g * jnp.tanh(c)
        hs.append(h)
    h_all = jnp.stack(hs)                                        # (S, B, H)
    logits = h_all @ params["w_out"].T + params["b_out"]         # (S, B, 2)
    policy = jax.nn.softmax(logits, axis=-1)
    return logits, policy


if __name__ == "__main__":
    key = jax.random.PRNGKey(0)
    pkey, xkey = jax.random.split(key)
    params = init_params(pkey)

    S, B = 8, 2                     # (seq_len, batch) — time-major like PyTorch LSTM
    x = jax.random.randint(xkey, (S, B), 0, 11, dtype=jnp.int32)

    out = reinforce_rational_extractor(x, params, 42, greedy=False, mask_token=0)
    out = jax.block_until_ready(out)

    # Structural checks.
    assert out["mask_logits"].shape == (S, B, 2)
    assert out["policy"].shape == (S, B, 2)
    assert out["chosen_policy"].shape == (S, B, 1)
    assert out["mask"].shape == (S, B) and out["mask"].dtype == jnp.bool_
    assert out["masked_input"].shape == (S, B)
    assert bool(jnp.all(jnp.abs(jnp.sum(out["policy"], axis=-1) - 1.0) < 1e-5))
    assert bool(jnp.all(out["policy"] >= 0.0))
    assert bool(jnp.all(jnp.where(out["mask"], out["masked_input"] == x,
                                  out["masked_input"] == 0)))

    # Numerical check against a pure-JAX reference of the PyTorch math.
    ref_logits, ref_policy = _reference_logits_policy(x, params)
    assert bool(jnp.allclose(out["mask_logits"], ref_logits, atol=5e-2, rtol=5e-2))
    assert bool(jnp.allclose(out["policy"], ref_policy, atol=5e-2, rtol=5e-2))

    print("KERNEL_OK")
</pallas_src>

<mosaic_0001>
module attributes {stable_mosaic.version = 11 : i64} {
  func.func @_rre_kernel(%arg0: memref<16x1xi32, #tpu.memory_space<vmem>>, %arg1: memref<16x1xf32, #tpu.memory_space<vmem>>, %arg2: memref<11x128xf32, #tpu.memory_space<vmem>>, %arg3: memref<32x128xf32, #tpu.memory_space<vmem>>, %arg4: memref<1x128xf32, #tpu.memory_space<vmem>>, %arg5: memref<32x2xf32, #tpu.memory_space<vmem>>, %arg6: memref<1x2xf32, #tpu.memory_space<vmem>>, %arg7: memref<16x128xf32, #tpu.memory_space<vmem>>, %arg8: memref<16x32xf32, #tpu.memory_space<vmem>>) attributes {dimension_semantics = [], scalar_prefetch = 0 : i64, scratch_operands = 1 : i64, tpu.core_type = #tpu.core_type<tc>} {
    %c0 = arith.constant 0 : index
    %c0_0 = arith.constant 0 : index
    %0 = vector.load %arg0[%c0, %c0_0] : memref<16x1xi32, #tpu.memory_space<vmem>>, vector<16x1xi32>
    %1 = tpu.iota {dimensions = array<i32: 1>} : vector<16x11xi32>
    %2 = vector.broadcast %0 : vector<16x1xi32> to vector<16x11xi32>
    %3 = arith.cmpi eq, %2, %1 : vector<16x11xi32>
    %4 = arith.extui %3 : vector<16x11xi1> to vector<16x11xi32>
    %5 = arith.sitofp %4 : vector<16x11xi32> to vector<16x11xf32>
    %c0_1 = arith.constant 0 : index
    %c0_2 = arith.constant 0 : index
    %6 = vector.load %arg2[%c0_1, %c0_2] : memref<11x128xf32, #tpu.memory_space<vmem>>, vector<11x128xf32>
    %cst = arith.constant dense<0.000000e+00> : vector<16x128xf32>
    %7 = tpu.matmul %5, %6, %cst {dimension_numbers = #tpu.dot_dimension_numbers<[1], [0], [0], [1], [0, 0, 1, 1], [], []>} : vector<16x11xf32>, vector<11x128xf32>, vector<16x128xf32> -> vector<16x128xf32>
    %c0_3 = arith.constant 0 : index
    %c0_4 = arith.constant 0 : index
    %8 = vector.load %arg4[%c0_3, %c0_4] : memref<1x128xf32, #tpu.memory_space<vmem>>, vector<1x128xf32>
    %9 = vector.broadcast %8 : vector<1x128xf32> to vector<16x128xf32>
    %10 = arith.addf %7, %9 : vector<16x128xf32>
    %c0_5 = arith.constant 0 : index
    %c0_6 = arith.constant 0 : index
    %11 = vector.load %arg3[%c0_5, %c0_6] : memref<32x128xf32, #tpu.memory_space<vmem>>, vector<32x128xf32>
    %cst_7 = arith.constant 0.000000e+00 : f32
    %12 = vector.broadcast %cst_7 : f32 to vector<2x32xf32>
    %cst_8 = arith.constant 0.000000e+00 : f32
    %13 = vector.broadcast %cst_8 : f32 to vector<2x32xf32>
    %14 = vector.extract_strided_slice %10 {offsets = [0, 0], sizes = [2, 128], strides = [1, 1]} : vector<16x128xf32> to vector<2x128xf32>
    %cst_9 = arith.constant dense<0.000000e+00> : vector<2x128xf32>
    %15 = tpu.matmul %12, %11, %cst_9 {dimension_numbers = #tpu.dot_dimension_numbers<[1], [0], [0], [1], [0, 0, 1, 1], [], []>} : vector<2x32xf32>, vector<32x128xf32>, vector<2x128xf32> -> vector<2x128xf32>
    %16 = arith.addf %14, %15 : vector<2x128xf32>
    %17 = arith.negf %16 : vector<2x128xf32>
    %18 = math.exp %17 : vector<2x128xf32>
    %cst_10 = arith.constant 1.000000e+00 : f32
    %19 = vector.broadcast %cst_10 : f32 to vector<2x128xf32>
    %20 = arith.addf %19, %18 : vector<2x128xf32>
    %21 = arith.divf %19, %20 : vector<2x128xf32>
    %22 = math.tanh %16 : vector<2x128xf32>
    %23 = vector.extract_strided_slice %21 {offsets = [0, 0], sizes = [2, 32], strides = [1, 1]} : vector<2x128xf32> to vector<2x32xf32>
    %24 = vector.extract_strided_slice %21 {offsets = [0, 32], sizes = [2, 32], strides = [1, 1]} : vector<2x128xf32> to vector<2x32xf32>
    %25 = vector.extract_strided_slice %22 {offsets = [0, 64], sizes = [2, 32], strides = [1, 1]} : vector<2x128xf32> to vector<2x32xf32>
    %26 = vector.extract_strided_slice %21 {offsets = [0, 96], sizes = [2, 32], strides = [1, 1]} : vector<2x128xf32> to vector<2x32xf32>
    %27 = arith.mulf %24, %13 : vector<2x32xf32>
    %28 = arith.mulf %23, %25 : vector<2x32xf32>
    %29 = arith.addf %27, %28 : vector<2x32xf32>
    %30 = math.tanh %29 : vector<2x32xf32>
    %31 = arith.mulf %26, %30 : vector<2x32xf32>
    %c0_11 = arith.constant 0 : index
    %c0_12 = arith.constant 0 : index
    %32 = vector.load %arg8[%c0_11, %c0_12] : memref<16x32xf32, #tpu.memory_space<vmem>>, vector<2x32xf32>
    tpu.vector_store %arg8[%c0_11, %c0_12], %31 {strides = array<i32>} : memref<16x32xf32, #tpu.memory_space<vmem>>, vector<2x32xf32>,
    %33 = vector.extract_strided_slice %10 {offsets = [2, 0], sizes = [2, 128], strides = [1, 1]} : vector<16x128xf32> to vector<2x128xf32>
    %cst_13 = arith.constant dense<0.000000e+00> : vector<2x128xf32>
    %34 = tpu.matmul %31, %11, %cst_13 {dimension_numbers = #tpu.dot_dimension_numbers<[1], [0], [0], [1], [0, 0, 1, 1], [], []>} : vector<2x32xf32>, vector<32x128xf32>, vector<2x128xf32> -> vector<2x128xf32>
    %35 = arith.addf %33, %34 : vector<2x128xf32>
    %36 = arith.negf %35 : vector<2x128xf32>
    %37 = math.exp %36 : vector<2x128xf32>
    %cst_14 = arith.constant 1.000000e+00 : f32
    %38 = vector.broadcast %cst_14 : f32 to vector<2x128xf32>
    %39 = arith.addf %38, %37 : vector<2x128xf32>
    %40 = arith.divf %38, %39 : vector<2x128xf32>
    %41 = math.tanh %35 : vector<2x128xf32>
    %42 = vector.extract_strided_slice %40 {offsets = [0, 0], sizes = [2, 32], strides = [1, 1]} : vector<2x128xf32> to vector<2x32xf32>
    %43 = vector.extract_strided_slice %40 {offsets = [0, 32], sizes = [2, 32], strides = [1, 1]} : vector<2x128xf32> to vector<2x32xf32>
    %44 = vector.extract_strided_slice %41 {offsets = [0, 64], sizes = [2, 32], strides = [1, 1]} : vector<2x128xf32> to vector<2x32xf32>
    %45 = vector.extract_strided_slice %40 {offsets = [0, 96], sizes = [2, 32], strides = [1, 1]} : vector<2x128xf32> to vector<2x32xf32>
    %46 = arith.mulf %43, %29 : vector<2x32xf32>
    %47 = arith.mulf %42, %44 : vector<2x32xf32>
    %48 = arith.addf %46, %47 : vector<2x32xf32>
    %49 = math.tanh %48 : vector<2x32xf32>
    %50 = arith.mulf %45, %49 : vector<2x32xf32>
    %c2 = arith.constant 2 : index
    %c0_15 = arith.constant 0 : index
    %51 = vector.load %arg8[%c2, %c0_15] : memref<16x32xf32, #tpu.memory_space<vmem>>, vector<2x32xf32>
    tpu.vector_store %arg8[%c2, %c0_15], %50 {strides = array<i32>} : memref<16x32xf32, #tpu.memory_space<vmem>>, vector<2x32xf32>,
    %52 = vector.extract_strided_slice %10 {offsets = [4, 0], sizes = [2, 128], strides = [1, 1]} : vector<16x128xf32> to vector<2x128xf32>
    %cst_16 = arith.constant dense<0.000000e+00> : vector<2x128xf32>
    %53 = tpu.matmul %50, %11, %cst_16 {dimension_numbers = #tpu.dot_dimension_numbers<[1], [0], [0], [1], [0, 0, 1, 1], [], []>} : vector<2x32xf32>, vector<32x128xf32>, vector<2x128xf32> -> vector<2x128xf32>
    %54 = arith.addf %52, %53 : vector<2x128xf32>
    %55 = arith.negf %54 : vector<2x128xf32>
    %56 = math.exp %55 : vector<2x128xf32>
    %cst_17 = arith.constant 1.000000e+00 : f32
    %57 = vector.broadcast %cst_17 : f32 to vector<2x128xf32>
    %58 = arith.addf %57, %56 : vector<2x128xf32>
    %59 = arith.divf %57, %58 : vector<2x128xf32>
    %60 = math.tanh %54 : vector<2x128xf32>
    %61 = vector.extract_strided_slice %59 {offsets = [0, 0], sizes = [2, 32], strides = [1, 1]} : vector<2x128xf32> to vector<2x32xf32>
    %62 = vector.extract_strided_slice %59 {offsets = [0, 32], sizes = [2, 32], strides = [1, 1]} : vector<2x128xf32> to vector<2x32xf32>
    %63 = vector.extract_strided_slice %60 {offsets = [0, 64], sizes = [2, 32], strides = [1, 1]} : vector<2x128xf32> to vector<2x32xf32>
    %64 = vector.extract_strided_slice %59 {offsets = [0, 96], sizes = [2, 32], strides = [1, 1]} : vector<2x128xf32> to vector<2x32xf32>
    %65 = arith.mulf %62, %48 : vector<2x32xf32>
    %66 = arith.mulf %61, %63 : vector<2x32xf32>
    %67 = arith.addf %65, %66 : vector<2x32xf32>
    %68 = math.tanh %67 : vector<2x32xf32>
    %69 = arith.mulf %64, %68 : vector<2x32xf32>
    %c4 = arith.constant 4 : index
    %c0_18 = arith.constant 0 : index
    %70 = vector.load %arg8[%c4, %c0_18] : memref<16x32xf32, #tpu.memory_space<vmem>>, vector<2x32xf32>
    tpu.vector_store %arg8[%c4, %c0_18], %69 {strides = array<i32>} : memref<16x32xf32, #tpu.memory_space<vmem>>, vector<2x32xf32>,
    %71 = vector.extract_strided_slice %10 {offsets = [6, 0], sizes = [2, 128], strides = [1, 1]} : vector<16x128xf32> to vector<2x128xf32>
    %cst_19 = arith.constant dense<0.000000e+00> : vector<2x128xf32>
    %72 = tpu.matmul %69, %11, %cst_19 {dimension_numbers = #tpu.dot_dimension_numbers<[1], [0], [0], [1], [0, 0, 1, 1], [], []>} : vector<2x32xf32>, vector<32x128xf32>, vector<2x128xf32> -> vector<2x128xf32>
    %73 = arith.addf %71, %72 : vector<2x128xf32>
    %74 = arith.negf %73 : vector<2x128xf32>
    %75 = math.exp %74 : vector<2x128xf32>
    %cst_20 = arith.constant 1.000000e+00 : f32
    %76 = vector.broadcast %cst_20 : f32 to vector<2x128xf32>
    %77 = arith.addf %76, %75 : vector<2x128xf32>
    %78 = arith.divf %76, %77 : vector<2x128xf32>
    %79 = math.tanh %73 : vector<2x128xf32>
    %80 = vector.extract_strided_slice %78 {offsets = [0, 0], sizes = [2, 32], strides = [1, 1]} : vector<2x128xf32> to vector<2x32xf32>
    %81 = vector.extract_strided_slice %78 {offsets = [0, 32], sizes = [2, 32], strides = [1, 1]} : vector<2x128xf32> to vector<2x32xf32>
    %82 = vector.extract_strided_slice %79 {offsets = [0, 64], sizes = [2, 32], strides = [1, 1]} : vector<2x128xf32> to vector<2x32xf32>
    %83 = vector.extract_strided_slice %78 {offsets = [0, 96], sizes = [2, 32], strides = [1, 1]} : vector<2x128xf32> to vector<2x32xf32>
    %84 = arith.mulf %81, %67 : vector<2x32xf32>
    %85 = arith.mulf %80, %82 : vector<2x32xf32>
    %86 = arith.addf %84, %85 : vector<2x32xf32>
    %87 = math.tanh %86 : vector<2x32xf32>
    %88 = arith.mulf %83, %87 : vector<2x32xf32>
    %c6 = arith.constant 6 : index
    %c0_21 = arith.constant 0 : index
    %89 = vector.load %arg8[%c6, %c0_21] : memref<16x32xf32, #tpu.memory_space<vmem>>, vector<2x32xf32>
    tpu.vector_store %arg8[%c6, %c0_21], %88 {strides = array<i32>} : memref<16x32xf32, #tpu.memory_space<vmem>>, vector<2x32xf32>,
    %90 = vector.extract_strided_slice %10 {offsets = [8, 0], sizes = [2, 128], strides = [1, 1]} : vector<16x128xf32> to vector<2x128xf32>
    %cst_22 = arith.constant dense<0.000000e+00> : vector<2x128xf32>
    %91 = tpu.matmul %88, %11, %cst_22 {dimension_numbers = #tpu.dot_dimension_numbers<[1], [0], [0], [1], [0, 0, 1, 1], [], []>} : vector<2x32xf32>, vector<32x128xf32>, vector<2x128xf32> -> vector<2x128xf32>
    %92 = arith.addf %90, %91 : vector<2x128xf32>
    %93 = arith.negf %92 : vector<2x128xf32>
    %94 = math.exp %93 : vector<2x128xf32>
    %cst_23 = arith.constant 1.000000e+00 : f32
    %95 = vector.broadcast %cst_23 : f32 to vector<2x128xf32>
    %96 = arith.addf %95, %94 : vector<2x128xf32>
    %97 = arith.divf %95, %96 : vector<2x128xf32>
    %98 = math.tanh %92 : vector<2x128xf32>
    %99 = vector.extract_strided_slice %97 {offsets = [0, 0], sizes = [2, 32], strides = [1, 1]} : vector<2x128xf32> to vector<2x32xf32>
    %100 = vector.extract_strided_slice %97 {offsets = [0, 32], sizes = [2, 32], strides = [1, 1]} : vector<2x128xf32> to vector<2x32xf32>
    %101 = vector.extract_strided_slice %98 {offsets = [0, 64], sizes = [2, 32], strides = [1, 1]} : vector<2x128xf32> to vector<2x32xf32>
    %102 = vector.extract_strided_slice %97 {offsets = [0, 96], sizes = [2, 32], strides = [1, 1]} : vector<2x128xf32> to vector<2x32xf32>
    %103 = arith.mulf %100, %86 : vector<2x32xf32>
    %104 = arith.mulf %99, %101 : vector<2x32xf32>
    %105 = arith.addf %103, %104 : vector<2x32xf32>
    %106 = math.tanh %105 : vector<2x32xf32>
    %107 = arith.mulf %102, %106 : vector<2x32xf32>
    %c8 = arith.constant 8 : index
    %c0_24 = arith.constant 0 : index
    %108 = vector.load %arg8[%c8, %c0_24] : memref<16x32xf32, #tpu.memory_space<vmem>>, vector<2x32xf32>
    tpu.vector_store %arg8[%c8, %c0_24], %107 {strides = array<i32>} : memref<16x32xf32, #tpu.memory_space<vmem>>, vector<2x32xf32>,
    %109 = vector.extract_strided_slice %10 {offsets = [10, 0], sizes = [2, 128], strides = [1, 1]} : vector<16x128xf32> to vector<2x128xf32>
    %cst_25 = arith.constant dense<0.000000e+00> : vector<2x128xf32>
    %110 = tpu.matmul %107, %11, %cst_25 {dimension_numbers = #tpu.dot_dimension_numbers<[1], [0], [0], [1], [0, 0, 1, 1], [], []>} : vector<2x32xf32>, vector<32x128xf32>, vector<2x128xf32> -> vector<2x128xf32>
    %111 = arith.addf %109, %110 : vector<2x128xf32>
    %112 = arith.negf %111 : vector<2x128xf32>
    %113 = math.exp %112 : vector<2x128xf32>
    %cst_26 = arith.constant 1.000000e+00 : f32
    %114 = vector.broadcast %cst_26 : f32 to vector<2x128xf32>
    %115 = arith.addf %114, %113 : vector<2x128xf32>
    %116 = arith.divf %114, %115 : vector<2x128xf32>
    %117 = math.tanh %111 : vector<2x128xf32>
    %118 = vector.extract_strided_slice %116 {offsets = [0, 0], sizes = [2, 32], strides = [1, 1]} : vector<2x128xf32> to vector<2x32xf32>
    %119 = vector.extract_strided_slice %116 {offsets = [0, 32], sizes = [2, 32], strides = [1, 1]} : vector<2x128xf32> to vector<2x32xf32>
    %120 = vector.extract_strided_slice %117 {offsets = [0, 64], sizes = [2, 32], strides = [1, 1]} : vector<2x128xf32> to vector<2x32xf32>
    %121 = vector.extract_strided_slice %116 {offsets = [0, 96], sizes = [2, 32], strides = [1, 1]} : vector<2x128xf32> to vector<2x32xf32>
    %122 = arith.mulf %119, %105 : vector<2x32xf32>
    %123 = arith.mulf %118, %120 : vector<2x32xf32>
    %124 = arith.addf %122, %123 : vector<2x32xf32>
    %125 = math.tanh %124 : vector<2x32xf32>
    %126 = arith.mulf %121, %125 : vector<2x32xf32>
    %c10 = arith.constant 10 : index
    %c0_27 = arith.constant 0 : index
    %127 = vector.load %arg8[%c10, %c0_27] : memref<16x32xf32, #tpu.memory_space<vmem>>, vector<2x32xf32>
    tpu.vector_store %arg8[%c10, %c0_27], %126 {strides = array<i32>} : memref<16x32xf32, #tpu.memory_space<vmem>>, vector<2x32xf32>,
    %128 = vector.extract_strided_slice %10 {offsets = [12, 0], sizes = [2, 128], strides = [1, 1]} : vector<16x128xf32> to vector<2x128xf32>
    %cst_28 = arith.constant dense<0.000000e+00> : vector<2x128xf32>
    %129 = tpu.matmul %126, %11, %cst_28 {dimension_numbers = #tpu.dot_dimension_numbers<[1], [0], [0], [1], [0, 0, 1, 1], [], []>} : vector<2x32xf32>, vector<32x128xf32>, vector<2x128xf32> -> vector<2x128xf32>
    %130 = arith.addf %128, %129 : vector<2x128xf32>
    %131 = arith.negf %130 : vector<2x128xf32>
    %132 = math.exp %131 : vector<2x128xf32>
    %cst_29 = arith.constant 1.000000e+00 : f32
    %133 = vector.broadcast %cst_29 : f32 to vector<2x128xf32>
    %134 = arith.addf %133, %132 : vector<2x128xf32>
    %135 = arith.divf %133, %134 : vector<2x128xf32>
    %136 = math.tanh %130 : vector<2x128xf32>
    %137 = vector.extract_strided_slice %135 {offsets = [0, 0], sizes = [2, 32], strides = [1, 1]} : vector<2x128xf32> to vector<2x32xf32>
    %138 = vector.extract_strided_slice %135 {offsets = [0, 32], sizes = [2, 32], strides = [1, 1]} : vector<2x128xf32> to vector<2x32xf32>
    %139 = vector.extract_strided_slice %136 {offsets = [0, 64], sizes = [2, 32], strides = [1, 1]} : vector<2x128xf32> to vector<2x32xf32>
    %140 = vector.extract_strided_slice %135 {offsets = [0, 96], sizes = [2, 32], strides = [1, 1]} : vector<2x128xf32> to vector<2x32xf32>
    %141 = arith.mulf %138, %124 : vector<2x32xf32>
    %142 = arith.mulf %137, %139 : vector<2x32xf32>
    %143 = arith.addf %141, %142 : vector<2x32xf32>
    %144 = math.tanh %143 : vector<2x32xf32>
    %145 = arith.mulf %140, %144 : vector<2x32xf32>
    %c12 = arith.constant 12 : index
    %c0_30 = arith.constant 0 : index
    %146 = vector.load %arg8[%c12, %c0_30] : memref<16x32xf32, #tpu.memory_space<vmem>>, vector<2x32xf32>
    tpu.vector_store %arg8[%c12, %c0_30], %145 {strides = array<i32>} : memref<16x32xf32, #tpu.memory_space<vmem>>, vector<2x32xf32>,
    %147 = vector.extract_strided_slice %10 {offsets = [14, 0], sizes = [2, 128], strides = [1, 1]} : vector<16x128xf32> to vector<2x128xf32>
    %cst_31 = arith.constant dense<0.000000e+00> : vector<2x128xf32>
    %148 = tpu.matmul %145, %11, %cst_31 {dimension_numbers = #tpu.dot_dimension_numbers<[1], [0], [0], [1], [0, 0, 1, 1], [], []>} : vector<2x32xf32>, vector<32x128xf32>, vector<2x128xf32> -> vector<2x128xf32>
    %149 = arith.addf %147, %148 : vector<2x128xf32>
    %150 = arith.negf %149 : vector<2x128xf32>
    %151 = math.exp %150 : vector<2x128xf32>
    %cst_32 = arith.constant 1.000000e+00 : f32
    %152 = vector.broadcast %cst_32 : f32 to vector<2x128xf32>
    %153 = arith.addf %152, %151 : vector<2x128xf32>
    %154 = arith.divf %152, %153 : vector<2x128xf32>
    %155 = math.tanh %149 : vector<2x128xf32>
    %156 = vector.extract_strided_slice %154 {offsets = [0, 0], sizes = [2, 32], strides = [1, 1]} : vector<2x128xf32> to vector<2x32xf32>
    %157 = vector.extract_strided_slice %154 {offsets = [0, 32], sizes = [2, 32], strides = [1, 1]} : vector<2x128xf32> to vector<2x32xf32>
    %158 = vector.extract_strided_slice %155 {offsets = [0, 64], sizes = [2, 32], strides = [1, 1]} : vector<2x128xf32> to vector<2x32xf32>
    %159 = vector.extract_strided_slice %154 {offsets = [0, 96], sizes = [2, 32], strides = [1, 1]} : vector<2x128xf32> to vector<2x32xf32>
    %160 = arith.mulf %157, %143 : vector<2x32xf32>
    %161 = arith.mulf %156, %158 : vector<2x32xf32>
    %162 = arith.addf %160, %161 : vector<2x32xf32>
    %163 = math.tanh %162 : vector<2x32xf32>
    %164 = arith.mulf %159, %163 : vector<2x32xf32>
    %c14 = arith.constant 14 : index
    %c0_33 = arith.constant 0 : index
    %165 = vector.load %arg8[%c14, %c0_33] : memref<16x32xf32, #tpu.memory_space<vmem>>, vector<2x32xf32>
    tpu.vector_store %arg8[%c14, %c0_33], %164 {strides = array<i32>} : memref<16x32xf32, #tpu.memory_space<vmem>>, vector<2x32xf32>,
    %c0_34 = arith.constant 0 : index
    %c0_35 = arith.constant 0 : index
    %166 = vector.load %arg8[%c0_34, %c0_35] : memref<16x32xf32, #tpu.memory_space<vmem>>, vector<16x32xf32>
    %c0_36 = arith.constant 0 : index
    %c0_37 = arith.constant 0 : index
    %167 = vector.load %arg5[%c0_36, %c0_37] : memref<32x2xf32, #tpu.memory_space<vmem>>, vector<32x2xf32>
    %cst_38 = arith.constant dense<0.000000e+00> : vector<16x2xf32>
    %168 = tpu.matmul %166, %167, %cst_38 {dimension_numbers = #tpu.dot_dimension_numbers<[1], [0], [0], [1], [0, 0, 1, 1], [], []>} : vector<16x32xf32>, vector<32x2xf32>, vector<16x2xf32> -> vector<16x2xf32>
    %c0_39 = arith.constant 0 : index
    %c0_40 = arith.constant 0 : index
    %169 = vector.load %arg6[%c0_39, %c0_40] : memref<1x2xf32, #tpu.memory_space<vmem>>, vector<1x2xf32>
    %170 = vector.broadcast %169 : vector<1x2xf32> to vector<16x2xf32>
    %171 = arith.addf %168, %170 : vector<16x2xf32>
    %172 = vector.extract_strided_slice %171 {offsets = [0, 0], sizes = [16, 1], strides = [1, 1]} : vector<16x2xf32> to vector<16x1xf32>
    %173 = vector.extract_strided_slice %171 {offsets = [0, 1], sizes = [16, 1], strides = [1, 1]} : vector<16x2xf32> to vector<16x1xf32>
    %174 = arith.subf %173, %172 : vector<16x1xf32>
    %175 = arith.negf %174 : vector<16x1xf32>
    %176 = math.exp %175 : vector<16x1xf32>
    %cst_41 = arith.constant 1.000000e+00 : f32
    %177 = vector.broadcast %cst_41 : f32 to vector<16x1xf32>
    %178 = arith.addf %177, %176 : vector<16x1xf32>
    %179 = arith.divf %177, %178 : vector<16x1xf32>
    %cst_42 = arith.constant 1.000000e+00 : f32
    %180 = vector.broadcast %cst_42 : f32 to vector<16x1xf32>
    %181 = arith.subf %180, %179 : vector<16x1xf32>
    %c0_43 = arith.constant 0 : index
    %c0_44 = arith.constant 0 : index
    %182 = vector.load %arg1[%c0_43, %c0_44] : memref<16x1xf32, #tpu.memory_space<vmem>>, vector<16x1xf32>
    %183 = arith.cmpf olt, %182, %179 : vector<16x1xf32>
    %184 = arith.extui %183 : vector<16x1xi1> to vector<16x1xi32>
    %185 = arith.sitofp %184 : vector<16x1xi32> to vector<16x1xf32>
    %186 = arith.select %183, %179, %181 : vector<16x1xi1>, vector<16x1xf32>
    %187 = arith.sitofp %0 : vector<16x1xi32> to vector<16x1xf32>
    %188 = arith.mulf %187, %185 : vector<16x1xf32>
    %cst_45 = arith.constant 1.000000e+00 : f32
    %189 = vector.broadcast %cst_45 : f32 to vector<16x1xf32>
    %190 = arith.subf %189, %185 : vector<16x1xf32>
    %cst_46 = arith.constant 0.000000e+00 : f32
    %191 = vector.broadcast %cst_46 : f32 to vector<16x1xf32>
    %192 = arith.mulf %190, %191 : vector<16x1xf32>
    %193 = arith.addf %188, %192 : vector<16x1xf32>
    %194 = tpu.iota {dimensions = array<i32: 1>} : vector<16x128xi32>
    %c0_i32 = arith.constant 0 : i32
    %195 = vector.broadcast %c0_i32 : i32 to vector<16x128xi32>
    %196 = arith.cmpi eq, %194, %195 : vector<16x128xi32>
    %cst_47 = arith.constant 0.000000e+00 : f32
    %197 = vector.shape_cast %172 : vector<16x1xf32> to vector<16x1xf32>
    %198 = vector.broadcast %197 : vector<16x1xf32> to vector<16x128xf32>
    %199 = vector.broadcast %cst_47 : f32 to vector<16x128xf32>
    %200 = arith.select %196, %198, %199 : vector<16x128xi1>, vector<16x128xf32>
    %c1_i32 = arith.constant 1 : i32
    %201 = vector.broadcast %c1_i32 : i32 to vector<16x128xi32>
    %202 = arith.cmpi eq, %194, %201 : vector<16x128xi32>
    %203 = vector.shape_cast %173 : vector<16x1xf32> to vector<16x1xf32>
    %204 = vector.broadcast %203 : vector<16x1xf32> to vector<16x128xf32>
    %205 = arith.select %202, %204, %200 : vector<16x128xi1>, vector<16x128xf32>
    %c2_i32 = arith.constant 2 : i32
    %206 = vector.broadcast %c2_i32 : i32 to vector<16x128xi32>
    %207 = arith.cmpi eq, %194, %206 : vector<16x128xi32>
    %208 = vector.shape_cast %181 : vector<16x1xf32> to vector<16x1xf32>
    %209 = vector.broadcast %208 : vector<16x1xf32> to vector<16x128xf32>
    %210 = arith.select %207, %209, %205 : vector<16x128xi1>, vector<16x128xf32>
    %c3_i32 = arith.constant 3 : i32
    %211 = vector.broadcast %c3_i32 : i32 to vector<16x128xi32>
    %212 = arith.cmpi eq, %194, %211 : vector<16x128xi32>
    %213 = vector.shape_cast %179 : vector<16x1xf32> to vector<16x1xf32>
    %214 = vector.broadcast %213 : vector<16x1xf32> to vector<16x128xf32>
    %215 = arith.select %212, %214, %210 : vector<16x128xi1>, vector<16x128xf32>
    %c4_i32 = arith.constant 4 : i32
    %216 = vector.broadcast %c4_i32 : i32 to vector<16x128xi32>
    %217 = arith.cmpi eq, %194, %216 : vector<16x128xi32>
    %218 = vector.shape_cast %186 : vector<16x1xf32> to vector<16x1xf32>
    %219 = vector.broadcast %218 : vector<16x1xf32> to vector<16x128xf32>
    %220 = arith.select %217, %219, %215 : vector<16x128xi1>, vector<16x128xf32>
    %c5_i32 = arith.constant 5 : i32
    %221 = vector.broadcast %c5_i32 : i32 to vector<16x128xi32>
    %222 = arith.cmpi eq, %194, %221 : vector<16x128xi32>
    %223 = vector.shape_cast %185 : vector<16x1xf32> to vector<16x1xf32>
    %224 = vector.broadcast %223 : vector<16x1xf32> to vector<16x128xf32>
    %225 = arith.select %222, %224, %220 : vector<16x128xi1>, vector<16x128xf32>
    %c6_i32 = arith.constant 6 : i32
    %226 = vector.broadcast %c6_i32 : i32 to vector<16x128xi32>
    %227 = arith.cmpi eq, %194, %226 : vector<16x128xi32>
    %228 = vector.shape_cast %193 : vector<16x1xf32> to vector<16x1xf32>
    %229 = vector.broadcast %228 : vector<16x1xf32> to vector<16x128xf32>
    %230 = arith.select %227, %229, %225 : vector<16x128xi1>, vector<16x128xf32>
    %c0_48 = arith.constant 0 : index
    %c0_49 = arith.constant 0 : index
    %231 = vector.load %arg7[%c0_48, %c0_49] : memref<16x128xf32, #tpu.memory_space<vmem>>, vector<16x128xf32>
    tpu.vector_store %arg7[%c0_48, %c0_49], %230 {strides = array<i32>} : memref<16x128xf32, #tpu.memory_space<vmem>>, vector<16x128xf32>,
    return
  }
}

</mosaic_0001>

<bundles_post_ra>
// kernel: reinforce_rational_extractor.1
= control target key start
LH: loop header
LB: loop body
LE: loop exit
PB: predicated region body
PF: predicated region fallthrough
CT: control target
= control target key end

     0   :  { %v1599_v0 = vmov 0   ;;  %v1600_v3 = vmov 0.0|0.0   ;;  %vm58_vm0 = vcmask 1042432   ;;  %vm1601_vm1 = vmmov 1   ;;  %s1606_s26 = smov 1   ;;  %s1865_s0 = inlined_call_operand.vmem [shape: s32[16,1], index: 0, kind: input, shape index: {}]   ;;  %s1866_s3 = inlined_call_operand.vmem [shape: f32[32,128], index: 3, kind: input, shape index: {}]   ;;  %s1867_s2 = inlined_call_operand.vmem [shape: f32[11,128], index: 2, kind: input, shape index: {}]   ;;  %s1868_s4 = inlined_call_operand.vmem [shape: f32[1,128], index: 4, kind: input, shape index: {}]   ;;  %s1869_s5 = inlined_call_operand.vmem [shape: f32[32,2], index: 5, kind: input, shape index: {}]   ;;  %s1870_s6 = inlined_call_operand.vmem [shape: f32[1,2], index: 6, kind: input, shape index: {}]   ;;  %s1871_s1 = inlined_call_operand.vmem [shape: f32[16,1], index: 1, kind: input, shape index: {}]   ;;  %s1872_s7 = inlined_call_operand.vmem [shape: f32[16,128], index: 7, kind: output, shape index: {}]  }
   0x1   :  { %1516 = vset.pattern.permute.xlu0 %v1599_v0  ;;  %v1653_v1 = vld [vmem:[%s1865_s0] sm:$0xff]  ;;  %1517 = vset.pattern.permute.xlu1 %v1599_v0  ;;  %v138_v4 = vld [vmem:[%s1866_s3 + $0x8] sm:$0xff]  ;;  %vm1445_vm2 = vmpackc.low %vm58_vm0, %vm1601_vm1  ;;  %vm1602_vm3 = vmmov 0   ;;  %v1603_v13 = vmov 0.0   ;;  %v28_v14 = vlaneseq  ;;  %vm51_vm4 = vcmask 89088  }
   0x2   :  { %v137_v2 = vld [vmem:[%s1866_s3] sm:$0xff]  ;;  %31 = vperm.xlu0 %1516, %v1653_v1   ;;  %1450 = vmatprep.subr.bf16.mxu1 %v1600_v3  ;;  %v43_v6 = vld [vmem:[%s1867_s2 + $0x8] sm:$0x7]  ;;  %v139_v10 = vld [vmem:[%s1866_s3 + $0x10] sm:$0xff]  ;;  %vm244_vm7 = vcmask 254976   ;;  %vm141_vm8 = vcmask 261120  }
   0x3   :  { %v42_v5 = vld [vmem:[%s1867_s2] sm:$0xff]  ;;  %v1673_v7 = vld [vmem:[%s1865_s0 + $0x8] sm:$0xff]  ;;  %v1675_v8 = vpack.c.bf16 %v138_v4, %v137_v2  ;;  %v140_v11 = vld [vmem:[%s1866_s3 + $0x18] sm:$0xff]  ;;  %1353 = vmatprep.mubr.msk.f32.mxu1 %vm1602_vm3, %v1603_v13  ;;  %v1700_v15 = vand.u32 127, %v28_v14  ;;  %s1604_s3 = smov 64   ;;  %vm353_vm9 = vcmask 257026  }
   0x4   :  { %v1444_v9 = vpack.c.bf16 %v43_v6, %v42_v5  ;;  %v1684_v12 = vpack.c.bf16 %v140_v11, %v139_v10  ;;  %v1262_v22 = vld [vmem:[%s1868_s4] ss:$0 sm:$0xff]  ;;  %s1605_s4 = smov 32   ;;  %vm577_vm10 = vcmask 261126   ;;  %vm465_vm11 = vcmask 259076  }
   0x5   :  { %1452 = vmatpush3.bf16.msra.mxu1 %v1675_v8  ;;  %vm1171_vm14 = vcmp.eq.s32.totalorder %v1700_v15, 0  ;;  %vm1182_vm15 = vcmp.eq.s32.totalorder %v1700_v15, 1  ;;  %vm1193_vm0 = vcmp.eq.s32.totalorder %v1700_v15, 2  ;;  %vm1204_vm1 = vcmp.eq.s32.totalorder %v1700_v15, 3 }
   0x6   :  { %1446 = vmatprep.subr.msk.bf16.mxu0 %vm1445_vm2, %v1444_v9  ;;  %34 = vperm.xlu0 %1516, %v1673_v7  }
   0x7   :  { %1449 = vmatpush3.bf16.msk.msra.mxu0 %vm1445_vm2, %v1444_v9  ;;  %1453 = vmatprep.subr.bf16.mxu1 %v1600_v3  ;;  %vm1215_vm2 = vcmp.eq.s32.totalorder %v1700_v15, 4 }
   0x8   :  { %1456 = vmatprep.subr.bf16.mxu0 %v1600_v3 }
   0x9   :  { %1455 = vmatpush3.bf16.msra.mxu1 %v1684_v12 }
   0xa   :  { %1462 = vmatprep.subr.bf16.mxu1 %v1600_v3 }
   0xc   :  { %1354 = vmatmul.mubr.f32.vlgmr.msra.gmra.mrb[0].mxu1 %v1603_v13 }
   0xd   :  { %1464 = vmatpush3.bf16.msra.mxu1 %v1675_v8  ;;  %1375 = vmatprep.mubr.msk.f32.mxu1 %vm1602_vm3, %v1603_v13 }
   0xe   :  { %1465 = vmatprep.subr.bf16.mxu1 %v1600_v3 }
  0x11   :  { %1467 = vmatpush3.bf16.msra.mxu1 %v1684_v12 }
  0x12   :  { %1474 = vmatprep.subr.bf16.mxu1 %v1600_v3 }
  0x81   :  { %v32_v16 = vpop.permute.xlu0 %31 }
  0x82   :  { %vm36_vm5 = vcmp.eq.s32.totalorder %v32_v16, %v1700_v15 }
  0x83   :  { %v1260_v17 = vsel %vm36_vm5, 1.0, %v1603_v13 }
  0x84   :  { %1342 = vmatprep.mubr.msk.f32.mxu0 %vm51_vm4, %v1260_v17 }
  0x85   :  { %v35_v18 = vpop.permute.xlu0 %34 }
  0x86   :  { %vm37_vm6 = vcmp.eq.s32.totalorder %v35_v18, %v1700_v15 }
  0x87   :  { %v1261_v19 = vsel %vm37_vm6, 1.0, %v1603_v13 }
  0x88   :  { %1343 = vmatmul.mubr.msk.f32.vlgmr.msra.gmra.mrb[0].mxu0 %vm51_vm4, %v1261_v19  ;;  %vm1241_vm4 = vcmp.eq.s32.totalorder %v1700_v15, 6 }
  0x89   :  { %1458 = vmatpush3.bf16.msra.mxu0 %v1675_v8  ;;  %1364 = vmatprep.mubr.msk.f32.mxu0 %vm1602_vm3, %v1603_v13 }
  0x8a   :  { %1459 = vmatprep.subr.bf16.mxu0 %v1600_v3 }
  0x8d   :  { %1461 = vmatpush3.bf16.msra.mxu0 %v1684_v12 }
  0x8e   :  { %1468 = vmatprep.subr.bf16.mxu0 %v1600_v3 }
  0xdf   :  { %v211_v20 = vpop.f32.mrb[0].mxu1 }
  0xe0   :  { %v1355_v21 = vpop.f32.mrb[1].mxu1 }
 0x15b   :  { %v1344_v23 = vpop.f32.mrb[0].mxu0 }
 0x15c   :  { %v1715_v24 = vadd.f32 %v1344_v23, %v1262_v22  ;;  %v128_v25 = vpop.f32.mrb[1].mxu0 }
 0x15d   :  { %v1717_v26 = vadd.f32 %v1262_v22, %v128_v25 }
 0x15f   :  { %v215_v27 = vadd.f32 %v211_v20, %v1717_v26 }
 0x161   :  { %1527 = vtanh.f32 %v215_v27  ;;  %v1266_v29 = vmul.f32 -1.442695, %v215_v27 }
 0x163   :  { %1529 = vpow2.f32 %v1266_v29 }
 0x16b   :  { %v1528_v28 = vpop.eup %1527 }
 0x16c   :  { %225 = vrot.lane.b32.xlu1 %v1528_v28, %s1604_s3 }
 0x16d   :  { %v1530_v30 = vpop.eup %1529 }
 0x16e   :  { %v219_v31 = vadd.f32 1.0, %v1530_v30 }
 0x170   :  { %1531 = vrcp.f32 %v219_v31 }
 0x17a   :  { %v1532_v32 = vpop.eup %1531 }
 0x17b   :  { %v223_v35 = vmul.f32 0.0, %v1532_v32 }
 0x1de   :  { %v226_v33 = vpop.permute.xlu1 %225 }
 0x1df   :  { %v228_v34 = vmul.f32 %v1532_v32, %v226_v33 }
 0x1e1   :  { %230 = vrot.lane.b32.xlu1 %v228_v34, %s1605_s4 }
 0x253   :  { %v231_v36 = vpop.permute.xlu1 %230 }
 0x254   :  { %v233_v37 = vadd.f32 %v231_v36, %v223_v35 }
 0x256   :  { %1533 = vtanh.f32 %v233_v37  ;;  %v330_v53 = vrot.slane %v233_v37, 6 }
 0x260   :  { %v1534_v38 = vpop.eup %1533 }
 0x261   :  { %236 = vrot.lane.b32.xlu0 %v1534_v38, %s1604_s3 }
 0x2d3   :  { %v237_v39 = vpop.permute.xlu0 %236 }
 0x2d4   :  { %v239_v40 = vmul.f32 %v1532_v32, %v237_v39 }
 0x2d6   :  { %241 = vrot.lane.b32.xlu1 %v239_v40, %s1605_s4 }
 0x348   :  { %v242_v41 = vpop.permute.xlu1 %241 }
 0x349   :  { %245 = vst.msk [vmem:[#allocation2] sm:$0x3] %vm244_vm7, %v242_v41  ;;  %1365 = vmatmul.mubr.msk.f32.vlgmr.msra.gmra.mrb[2].mxu0 %vm141_vm8, %v242_v41 }
 0x34a   :  { %1470 = vmatpush3.bf16.msra.mxu0 %v1675_v8  ;;  %1386 = vmatprep.mubr.msk.f32.mxu0 %vm1602_vm3, %v1603_v13 }
 0x34b   :  { %1471 = vmatprep.subr.bf16.mxu0 %v1600_v3 }
 0x34e   :  { %1473 = vmatpush3.bf16.msra.mxu0 %v1684_v12 }
 0x34f   :  { %1480 = vmatprep.subr.bf16.mxu0 %v1600_v3 }
 0x41c   :  { %v314_v42 = vpop.f32.mrb[2].mxu0 }
 0x41d   :  { %v319_v43 = vrot.slane %v314_v42, 6  ;;  %v1366_v44 = vpop.f32.mrb[3].mxu0 }
 0x41f   :  { %v321_v45 = vadd.f32 %v319_v43, %v1717_v26 }
 0x421   :  { %1535 = vtanh.f32 %v321_v45  ;;  %v1268_v47 = vmul.f32 -1.442695, %v321_v45 }
 0x423   :  { %1537 = vpow2.f32 %v1268_v47 }
 0x42b   :  { %v1536_v46 = vpop.eup %1535 }
 0x42c   :  { %334 = vrot.lane.b32.xlu0 %v1536_v46, %s1604_s3 }
 0x42d   :  { %v1538_v48 = vpop.eup %1537 }
 0x42e   :  { %v325_v49 = vadd.f32 1.0, %v1538_v48 }
 0x430   :  { %1539 = vrcp.f32 %v325_v49 }
 0x43a   :  { %v1540_v50 = vpop.eup %1539 }
 0x43b   :  { %v332_v54 = vmul.f32 %v1540_v50, %v330_v53 }
 0x49e   :  { %v335_v51 = vpop.permute.xlu0 %334 }
 0x49f   :  { %v337_v52 = vmul.f32 %v1540_v50, %v335_v51 }
 0x4a1   :  { %339 = vrot.lane.b32.xlu1 %v337_v52, %s1605_s4 }
 0x513   :  { %v340_v55 = vpop.permute.xlu1 %339 }
 0x514   :  { %v342_v56 = vadd.f32 %v340_v55, %v332_v54 }
 0x516   :  { %1541 = vtanh.f32 %v342_v56  ;;  %v442_v17 = vrot.slane %v342_v56, 6 }
 0x520   :  { %v1542_v57 = vpop.eup %1541 }
 0x521   :  { %345 = vrot.lane.b32.xlu0 %v1542_v57, %s1604_s3 }
 0x593   :  { %v346_v58 = vpop.permute.xlu0 %345 }
 0x594   :  { %v1736_v59 = vmul.f32 %v1540_v50, %v346_v58 }
 0x596   :  { %v355_v60 = vrot.slane %v1736_v59, 2 }
 0x598   :  { %356 = vrot.lane.b32.xlu1 %v355_v60, %s1605_s4 }
 0x60a   :  { %v357_v61 = vpop.permute.xlu1 %356 }
 0x60b   :  { %1376 = vmatmul.mubr.msk.f32.vlgmr.msra.gmra.mrb[2].mxu1 %vm141_vm8, %v357_v61 }
 0x60c   :  { %1476 = vmatpush3.bf16.msra.mxu1 %v1675_v8  ;;  %1397 = vmatprep.mubr.msk.f32.mxu1 %vm1602_vm3, %v1603_v13 }
 0x60d   :  { %1477 = vmatprep.subr.bf16.mxu1 %v1600_v3 }
 0x610   :  { %1479 = vmatpush3.bf16.msra.mxu1 %v1684_v12 }
 0x611   :  { %1486 = vmatprep.subr.bf16.mxu1 %v1600_v3 }
 0x6de   :  { %v426_v62 = vpop.f32.mrb[2].mxu1 }
 0x6df   :  { %v431_v63 = vrot.slane %v426_v62, 4  ;;  %v1377_v2 = vpop.f32.mrb[3].mxu1 }
 0x6e1   :  { %v433_v4 = vadd.f32 %v431_v63, %v1717_v26 }
 0x6e3   :  { %1543 = vtanh.f32 %v433_v4  ;;  %v1270_v6 = vmul.f32 -1.442695, %v433_v4 }
 0x6e5   :  { %1545 = vpow2.f32 %v1270_v6 }
 0x6ed   :  { %v1544_v5 = vpop.eup %1543 }
 0x6ee   :  { %446 = vrot.lane.b32.xlu0 %v1544_v5, %s1604_s3 }
 0x6ef   :  { %v1546_v9 = vpop.eup %1545 }
 0x6f0   :  { %v437_v10 = vadd.f32 1.0, %v1546_v9 }
 0x6f2   :  { %1547 = vrcp.f32 %v437_v10 }
 0x6fc   :  { %v1548_v11 = vpop.eup %1547 }
 0x6fd   :  { %v444_v18 = vmul.f32 %v1548_v11, %v442_v17 }
 0x760   :  { %v447_v14 = vpop.permute.xlu0 %446 }
 0x761   :  { %v449_v16 = vmul.f32 %v1548_v11, %v447_v14 }
 0x763   :  { %451 = vrot.lane.b32.xlu1 %v449_v16, %s1605_s4 }
 0x7d5   :  { %v452_v19 = vpop.permute.xlu1 %451 }
 0x7d6   :  { %v454_v20 = vadd.f32 %v452_v19, %v444_v18 }
 0x7d8   :  { %1549 = vtanh.f32 %v454_v20  ;;  %v554_v39 = vrot.slane %v454_v20, 6 }
 0x7e2   :  { %v1550_v21 = vpop.eup %1549 }
 0x7e3   :  { %457 = vrot.lane.b32.xlu0 %v1550_v21, %s1604_s3 }
 0x855   :  { %v458_v22 = vpop.permute.xlu0 %457 }
 0x856   :  { %v1751_v23 = vmul.f32 %v1548_v11, %v458_v22 }
 0x858   :  { %v467_v25 = vrot.slane %v1751_v23, 4 }
 0x85a   :  { %468 = vrot.lane.b32.xlu1 %v467_v25, %s1605_s4 }
 0x8cc   :  { %v469_v27 = vpop.permute.xlu1 %468 }
 0x8cd   :  { %1387 = vmatmul.mubr.msk.f32.vlgmr.msra.gmra.mrb[4].mxu0 %vm141_vm8, %v469_v27 }
 0x8ce   :  { %1482 = vmatpush3.bf16.msra.mxu0 %v1675_v8  ;;  %1408 = vmatprep.mubr.msk.f32.mxu0 %vm1602_vm3, %v1603_v13 }
 0x8cf   :  { %1483 = vmatprep.subr.bf16.mxu0 %v1600_v3 }
 0x8d2   :  { %1485 = vmatpush3.bf16.msra.mxu0 %v1684_v12 }
 0x8d3   :  { %1492 = vmatprep.subr.bf16.mxu0 %v1600_v3 }
 0x9a0   :  { %v538_v28 = vpop.f32.mrb[4].mxu0 }
 0x9a1   :  { %v543_v29 = vrot.slane %v538_v28, 2  ;;  %v1388_v30 = vpop.f32.mrb[5].mxu0 }
 0x9a3   :  { %v545_v31 = vadd.f32 %v543_v29, %v1717_v26 }
 0x9a5   :  { %1551 = vtanh.f32 %v545_v31  ;;  %v1272_v33 = vmul.f32 -1.442695, %v545_v31 }
 0x9a7   :  { %1553 = vpow2.f32 %v1272_v33 }
 0x9af   :  { %v1552_v32 = vpop.eup %1551 }
 0x9b0   :  { %558 = vrot.lane.b32.xlu0 %v1552_v32, %s1604_s3 }
 0x9b1   :  { %v1554_v34 = vpop.eup %1553 }
 0x9b2   :  { %v549_v35 = vadd.f32 1.0, %v1554_v34 }
 0x9b4   :  { %1555 = vrcp.f32 %v549_v35 }
 0x9be   :  { %v1556_v36 = vpop.eup %1555 }
 0x9bf   :  { %v556_v40 = vmul.f32 %v1556_v36, %v554_v39 }
 0xa22   :  { %v559_v37 = vpop.permute.xlu0 %558 }
 0xa23   :  { %v561_v38 = vmul.f32 %v1556_v36, %v559_v37 }
 0xa25   :  { %563 = vrot.lane.b32.xlu1 %v561_v38, %s1605_s4 }
 0xa97   :  { %v564_v41 = vpop.permute.xlu1 %563 }
 0xa98   :  { %v566_v42 = vadd.f32 %v564_v41, %v556_v40 }
 0xa9a   :  { %1557 = vtanh.f32 %v566_v42  ;;  %v663_v57 = vrot.slane %v566_v42, 6 }
 0xaa4   :  { %v1558_v26 = vpop.eup %1557 }
 0xaa5   :  { %569 = vrot.lane.b32.xlu0 %v1558_v26, %s1604_s3 }
 0xb17   :  { %v570_v43 = vpop.permute.xlu0 %569 }
 0xb18   :  { %v1766_v44 = vmul.f32 %v1556_v36, %v570_v43 }
 0xb1a   :  { %v579_v45 = vrot.slane %v1766_v44, 6 }
 0xb1c   :  { %580 = vrot.lane.b32.xlu1 %v579_v45, %s1605_s4 }
 0xb8e   :  { %v581_v46 = vpop.permute.xlu1 %580 }
 0xb8f   :  { %1398 = vmatmul.mubr.msk.f32.vlgmr.msra.gmra.mrb[4].mxu1 %vm141_vm8, %v581_v46 }
 0xb90   :  { %1488 = vmatpush3.bf16.msra.mxu1 %v1675_v8  ;;  %1419 = vmatprep.mubr.msk.f32.mxu1 %vm1602_vm3, %v1603_v13 }
 0xb91   :  { %1489 = vmatprep.subr.bf16.mxu1 %v1600_v3 }
 0xb94   :  { %1491 = vmatpush3.bf16.msra.mxu1 %v1684_v12 }
 0xc62   :  { %v650_v47 = vpop.f32.mrb[4].mxu1 }
 0xc63   :  { %v654_v48 = vadd.f32 %v650_v47, %v1715_v24  ;;  %v1399_v49 = vpop.f32.mrb[5].mxu1 }
 0xc65   :  { %1559 = vtanh.f32 %v654_v48  ;;  %v1274_v51 = vmul.f32 -1.442695, %v654_v48 }
 0xc67   :  { %1561 = vpow2.f32 %v1274_v51 }
 0xc6f   :  { %v1560_v50 = vpop.eup %1559 }
 0xc70   :  { %667 = vrot.lane.b32.xlu0 %v1560_v50, %s1604_s3 }
 0xc71   :  { %v1562_v52 = vpop.eup %1561 }
 0xc72   :  { %v658_v53 = vadd.f32 1.0, %v1562_v52 }
 0xc74   :  { %1563 = vrcp.f32 %v658_v53 }
 0xc7e   :  { %v1564_v54 = vpop.eup %1563 }
 0xc7f   :  { %v665_v58 = vmul.f32 %v1564_v54, %v663_v57 }
 0xce2   :  { %v668_v55 = vpop.permute.xlu0 %667 }
 0xce3   :  { %v670_v56 = vmul.f32 %v1564_v54, %v668_v55 }
 0xce5   :  { %672 = vrot.lane.b32.xlu1 %v670_v56, %s1605_s4 }
 0xd57   :  { %v673_v60 = vpop.permute.xlu1 %672 }
 0xd58   :  { %v675_v61 = vadd.f32 %v673_v60, %v665_v58 }
 0xd5a   :  { %1565 = vtanh.f32 %v675_v61 }
 0xd64   :  { %v1566_v62 = vpop.eup %1565 }
 0xd65   :  { %678 = vrot.lane.b32.xlu0 %v1566_v62, %s1604_s3 }
 0xdd7   :  { %v679_v63 = vpop.permute.xlu0 %678 }
 0xdd8   :  { %v681_v2 = vmul.f32 %v1564_v54, %v679_v63 }
 0xdda   :  { %683 = vrot.lane.b32.xlu1 %v681_v2, %s1605_s4 }
 0xe4c   :  { %v684_v4 = vpop.permute.xlu1 %683 }
 0xe4d   :  { %686 = vst.msk [vmem:[#allocation2 + $0x8] sm:$0x3] %vm244_vm7, %v684_v4  ;;  %1409 = vmatmul.mubr.msk.f32.vlgmr.msra.gmra.mrb[6].mxu0 %vm141_vm8, %v684_v4 }
 0xe4e   :  { %1494 = vmatpush3.bf16.msra.mxu0 %v1675_v8  ;;  %1430 = vmatprep.mubr.msk.f32.mxu0 %vm1602_vm3, %v1603_v13  ;;  %vm1228_vm3 = vcmp.eq.s32.totalorder %v1700_v15, 5 }
 0xe4f   :  { %1495 = vmatprep.subr.bf16.mxu0 %v1600_v3  ;;  %v771_v3 = vrot.slane %v675_v61, 6 }
 0xe52   :  { %1497 = vmatpush3.bf16.msra.mxu0 %v1684_v12 }
 0xf20   :  { %v755_v5 = vpop.f32.mrb[6].mxu0 }
 0xf21   :  { %v760_v6 = vrot.slane %v755_v5, 6  ;;  %v1410_v9 = vpop.f32.mrb[7].mxu0 }
 0xf22   :  { %v1020_v9 = vld [vmem:[%s1869_s5 + $0x8] sm:$0xff] }
 0xf23   :  { %v762_v10 = vadd.f32 %v760_v6, %v1715_v24 }
 0xf25   :  { %1567 = vtanh.f32 %v762_v10  ;;  %v1276_v14 = vmul.f32 -1.442695, %v762_v10 }
 0xf27   :  { %1569 = vpow2.f32 %v1276_v14 }
 0xf2f   :  { %v1568_v11 = vpop.eup %1567 }
 0xf30   :  { %775 = vrot.lane.b32.xlu0 %v1568_v11, %s1604_s3  ;;  %v1021_v11 = vld [vmem:[%s1869_s5 + $0x10] sm:$0xff] }
 0xf31   :  { %v1570_v16 = vpop.eup %1569 }
 0xf32   :  { %v766_v8 = vadd.f32 1.0, %v1570_v16 }
 0xf34   :  { %1571 = vrcp.f32 %v766_v8 }
 0xf3e   :  { %v1572_v17 = vpop.eup %1571 }
 0xf3f   :  { %v773_v12 = vmul.f32 %v1572_v17, %v771_v3 }
 0xfa2   :  { %v776_v18 = vpop.permute.xlu0 %775 }
 0xfa3   :  { %v778_v19 = vmul.f32 %v1572_v17, %v776_v18 }
 0xfa5   :  { %780 = vrot.lane.b32.xlu1 %v778_v19, %s1605_s4 }
0x1017   :  { %v781_v20 = vpop.permute.xlu1 %780 }
0x1018   :  { %v783_v21 = vadd.f32 %v781_v20, %v773_v12  ;;  %v1281_v20 = vld [vmem:[%s1870_s6] ss:$0 sm:$0xff]  ;;  %s1608_s6 = smov 127  }
0x101a   :  { %1573 = vtanh.f32 %v783_v21  ;;  %v882_v41 = vrot.slane %v783_v21, 6 }
0x1024   :  { %v1574_v22 = vpop.eup %1573 }
0x1025   :  { %786 = vrot.lane.b32.xlu0 %v1574_v22, %s1604_s3 }
0x1097   :  { %v787_v25 = vpop.permute.xlu0 %786 }
0x1098   :  { %v1792_v27 = vmul.f32 %v1572_v17, %v787_v25 }
0x109a   :  { %v795_v28 = vrot.slane %v1792_v27, 2 }
0x109c   :  { %796 = vrot.lane.b32.xlu1 %v795_v28, %s1605_s4  ;;  %v1607_v28 = vmov 1  }
0x109d   :  { %1519 = vset.pattern.permute.xlu0 %v1607_v28 }
0x110e   :  { %v797_v29 = vpop.permute.xlu1 %796 }
0x110f   :  { %1420 = vmatmul.mubr.msk.f32.vlgmr.msra.gmra.mrb[6].mxu1 %vm141_vm8, %v797_v29 }
0x11e2   :  { %v866_v30 = vpop.f32.mrb[6].mxu1 }
0x11e3   :  { %v871_v31 = vrot.slane %v866_v30, 4  ;;  %v1421_v32 = vpop.f32.mrb[7].mxu1 }
0x11e5   :  { %v873_v33 = vadd.f32 %v871_v31, %v1715_v24 }
0x11e7   :  { %1575 = vtanh.f32 %v873_v33  ;;  %v1278_v35 = vmul.f32 -1.442695, %v873_v33 }
0x11e9   :  { %1577 = vpow2.f32 %v1278_v35 }
0x11f1   :  { %v1576_v34 = vpop.eup %1575 }
0x11f2   :  { %886 = vrot.lane.b32.xlu0 %v1576_v34, %s1604_s3 }
0x11f3   :  { %v1578_v36 = vpop.eup %1577 }
0x11f4   :  { %v877_v37 = vadd.f32 1.0, %v1578_v36 }
0x11f6   :  { %1579 = vrcp.f32 %v877_v37 }
0x1200   :  { %v1580_v38 = vpop.eup %1579 }
0x1201   :  { %v884_v42 = vmul.f32 %v1580_v38, %v882_v41 }
0x1264   :  { %v887_v39 = vpop.permute.xlu0 %886 }
0x1265   :  { %v889_v40 = vmul.f32 %v1580_v38, %v887_v39 }
0x1267   :  { %891 = vrot.lane.b32.xlu1 %v889_v40, %s1605_s4 }
0x12d9   :  { %v892_v26 = vpop.permute.xlu1 %891 }
0x12da   :  { %v894_v43 = vadd.f32 %v892_v26, %v884_v42  ;;  %v1136_v26 = vld [vmem:[%s1871_s1 + $0x8] sm:$0xff] }
0x12dc   :  { %1581 = vtanh.f32 %v894_v43 }
0x12e6   :  { %v1582_v45 = vpop.eup %1581 }
0x12e7   :  { %897 = vrot.lane.b32.xlu0 %v1582_v45, %s1604_s3 }
0x1359   :  { %v898_v46 = vpop.permute.xlu0 %897 }
0x135a   :  { %v900_v47 = vmul.f32 %v1580_v38, %v898_v46 }
0x135c   :  { %v906_v48 = vrot.slane %v900_v47, 4 }
0x135e   :  { %907 = vrot.lane.b32.xlu1 %v906_v48, %s1605_s4 }
0x13d0   :  { %v908_v49 = vpop.permute.xlu1 %907 }
0x13d1   :  { %1431 = vmatmul.mubr.msk.f32.vlgmr.msra.gmra.mrb[8].mxu0 %vm141_vm8, %v908_v49 }
0x14a4   :  { %v977_v50 = vpop.f32.mrb[8].mxu0 }
0x14a5   :  { %v982_v51 = vrot.slane %v977_v50, 2  ;;  %v1432_v52 = vpop.f32.mrb[9].mxu0 }
0x14a7   :  { %v984_v53 = vadd.f32 %v982_v51, %v1715_v24  ;;  %v993_v24 = vrot.slane %v894_v43, 6  ;;  %v1135_v43 = vld [vmem:[%s1871_s1] sm:$0xff] }
0x14a9   :  { %1583 = vtanh.f32 %v984_v53  ;;  %v1280_v55 = vmul.f32 -1.442695, %v984_v53 }
0x14ab   :  { %1585 = vpow2.f32 %v1280_v55 }
0x14b3   :  { %v1584_v54 = vpop.eup %1583 }
0x14b4   :  { %997 = vrot.lane.b32.xlu0 %v1584_v54, %s1604_s3  ;;  %v1162_v54 = vcvt.s32.f32 %v1673_v7 }
0x14b5   :  { %v1586_v56 = vpop.eup %1585 }
0x14b6   :  { %v988_v57 = vadd.f32 1.0, %v1586_v56 }
0x14b8   :  { %1587 = vrcp.f32 %v988_v57 }
0x14c2   :  { %v1588_v58 = vpop.eup %1587 }
0x14c3   :  { %v995_v62 = vmul.f32 %v1588_v58, %v993_v24 }
0x1526   :  { %v998_v60 = vpop.permute.xlu0 %997 }
0x1527   :  { %v1000_v61 = vmul.f32 %v1588_v58, %v998_v60 }
0x1529   :  { %1002 = vrot.lane.b32.xlu1 %v1000_v61, %s1605_s4 }
0x152d   :  { %350 = vrot.lane.b32.xlu1 %v1736_v59, %s1605_s4 }
0x1531   :  { %574 = vrot.lane.b32.xlu1 %v1766_v44, %s1605_s4  ;;  %v1019_v44 = vld [vmem:[%s1869_s5] sm:$0xff] }
0x1532   :  { %v1498_v10 = vpack.c.bf16 %v1020_v9, %v1019_v44 }
0x1534   :  { %1499 = vmatprep.subr.bf16.mxu1 %v1498_v10 }
0x1535   :  { %902 = vrot.lane.b32.xlu1 %v900_v47, %s1605_s4  ;;  %1501 = vmatpush3.bf16.msra.mxu1 %v1498_v10  ;;  %v1161_v47 = vcvt.s32.f32 %v1653_v1 }
0x159b   :  { %v1003_v63 = vpop.permute.xlu1 %1002 }
0x159c   :  { %v1005_v2 = vadd.f32 %v1003_v63, %v995_v62 }
0x159e   :  { %1589 = vtanh.f32 %v1005_v2 }
0x159f   :  { %v351_v4 = vpop.permute.xlu1 %350 }
0x15a0   :  { %354 = vst.msk [vmem:[#allocation2] sm:$0xc] %vm353_vm9, %v351_v4 }
0x15a3   :  { %v575_v5 = vpop.permute.xlu1 %574 }
0x15a4   :  { %578 = vst.msk [vmem:[#allocation2] sm:$0xc0] %vm577_vm10, %v575_v5 }
0x15a7   :  { %v903_v59 = vpop.permute.xlu1 %902 }
0x15a8   :  { %v1590_v6 = vpop.eup %1589  ;;  %905 = vst.msk [vmem:[#allocation2 + $0x8] sm:$0x30] %vm465_vm11, %v903_v59 }
0x15a9   :  { %1008 = vrot.lane.b32.xlu0 %v1590_v6, %s1604_s3 }
0x15ad   :  { %462 = vrot.lane.b32.xlu0 %v1751_v23, %s1605_s4  ;;  %v1022_v23 = vld [vmem:[%s1869_s5 + $0x18] sm:$0xff] }
0x15ae   :  { %v1502_v14 = vpack.c.bf16 %v1022_v23, %v1021_v11 }
0x15b0   :  { %1503 = vmatprep.subr.bf16.mxu1 %v1502_v14 }
0x15b1   :  { %791 = vrot.lane.b32.xlu0 %v1792_v27, %s1605_s4  ;;  %1505 = vmatpush3.bf16.msra.mxu1 %v1502_v14 }
0x161b   :  { %v1009_v16 = vpop.permute.xlu0 %1008 }
0x161c   :  { %v1011_v8 = vmul.f32 %v1588_v58, %v1009_v16 }
0x161e   :  { %1013 = vrot.lane.b32.xlu0 %v1011_v8, %s1605_s4 }
0x161f   :  { %v463_v17 = vpop.permute.xlu0 %462 }
0x1620   :  { %466 = vst.msk [vmem:[#allocation2] sm:$0x30] %vm465_vm11, %v463_v17 }
0x1623   :  { %v792_v18 = vpop.permute.xlu0 %791 }
0x1624   :  { %794 = vst.msk [vmem:[#allocation2 + $0x8] sm:$0xc] %vm353_vm9, %v792_v18 }
0x1627   :  { %v1017_v19 = vld [vmem:[#allocation2] sm:$0xff] }
0x1628   :  { %1441 = vmatprep.mubr.msk.f32.mxu1 %vm141_vm8, %v1017_v19 }
0x1690   :  { %v1014_v3 = vpop.permute.xlu0 %1013 }
0x1691   :  { %1016 = vst.msk [vmem:[#allocation2 + $0x8] sm:$0xc0] %vm577_vm10, %v1014_v3 }
0x1698   :  { %v1018_v12 = vld [vmem:[#allocation2 + $0x8] sm:$0xff] }
0x1699   :  { %1442 = vmatmul.mubr.msk.f32.vlgmr.msra.gmra.mrb[8].mxu1 %vm141_vm8, %v1018_v12 }
0x176c   :  { %v1443_v21 = vpop.f32.mrb[8].mxu1 }
0x176d   :  { %v1108_v22 = vadd.f32 %v1443_v21, %v1281_v20  ;;  %v1102_v25 = vpop.f32.mrb[9].mxu1 }
0x176e   :  { %v1103_v27 = vadd.f32 %v1281_v20, %v1102_v25 }
0x176f   :  { %1115 = vrot.lane.b32.xlu0 %v1108_v22, %s1606_s26 }
0x1770   :  { %1113 = vrot.lane.b32.xlu1 %v1103_v27, %s1606_s26 }
0x17e1   :  { %v1116_v29 = vpop.permute.xlu0 %1115 }
0x17e2   :  { %v1120_v30 = vsub.f32 %v1108_v22, %v1116_v29  ;;  %v1114_v31 = vpop.permute.xlu1 %1113 }
0x17e3   :  { %v1119_v32 = vsub.f32 %v1103_v27, %v1114_v31 }
0x17e4   :  { %v1285_v33 = vmul.f32 -1.442695, %v1120_v30 }
0x17e5   :  { %v1284_v34 = vmul.f32 -1.442695, %v1119_v32 }
0x17e6   :  { %1591 = vpow2.f32 %v1285_v33 }
0x17e7   :  { %1593 = vpow2.f32 %v1284_v34 }
0x17f0   :  { %v1592_v35 = vpop.eup %1591 }
0x17f1   :  { %v1594_v36 = vpop.eup %1593  ;;  %v1128_v37 = vadd.f32 1.0, %v1592_v35 }
0x17f2   :  { %v1127_v38 = vadd.f32 1.0, %v1594_v36 }
0x17f3   :  { %1595 = vrcp.f32 %v1128_v37 }
0x17f4   :  { %1597 = vrcp.f32 %v1127_v38 }
0x17fd   :  { %v1596_v39 = vpop.eup %1595 }
0x17fe   :  { %v1598_v40 = vpop.eup %1597  ;;  %1141 = vrot.lane.b32.xlu0 %v1596_v39, %s1608_s6  ;;  %v1134_v41 = vsub.f32 1.0, %v1596_v39 }
0x17ff   :  { %1139 = vrot.lane.b32.xlu1 %v1598_v40, %s1608_s6  ;;  %v1133_v42 = vsub.f32 1.0, %v1598_v40 }
0x1802   :  { %1155 = vrot.lane.b32.xlu0 %v1134_v41, %s1608_s6 }
0x1803   :  { %1153 = vrot.lane.b32.xlu1 %v1133_v42, %s1608_s6 }
0x1806   :  { %1188 = vperm.xlu0 %1519, %v1108_v22  }
0x1807   :  { %1173 = vperm.xlu1 %1517, %v1103_v27  }
0x180a   :  { %1206 = vperm.xlu0 %1519, %v1598_v40  }
0x180b   :  { %1518 = vset.pattern.permute.xlu1 %v1607_v28 }
0x180c   :  { %1184 = vperm.xlu1 %1518, %v1103_v27  }
0x180e   :  { %1520 = vset.pattern.permute.xlu0 %v1599_v0 }
0x180f   :  { %1177 = vperm.xlu0 %1520, %v1108_v22  }
0x1810   :  { %1199 = vperm.xlu1 %1518, %v1134_v41  }
0x1814   :  { %1210 = vperm.xlu1 %1518, %v1596_v39  }
0x1818   :  { %1195 = vperm.xlu1 %1518, %v1133_v42  }
0x181c   :  { %1521 = vset.pattern.permute.xlu1 %v1599_v0 }
0x1870   :  { %v1142_v45 = vpop.permute.xlu0 %1141 }
0x1871   :  { %vm1146_vm12 = vcmp.lt.f32.partialorder %v1136_v26, %v1142_v45  ;;  %v1140_v46 = vpop.permute.xlu1 %1139 }
0x1872   :  { %v1287_v48 = vsel %vm1146_vm12, 1.0, %v1603_v13  ;;  %vm1145_vm13 = vcmp.lt.f32.partialorder %v1135_v43, %v1140_v46 }
0x1873   :  { %v1286_v49 = vsel %vm1145_vm13, 1.0, %v1603_v13  ;;  %v1166_v50 = vsub.f32 1.0, %v1287_v48  ;;  %v1164_v61 = vmul.f32 %v1287_v48, %v1162_v54 }
0x1874   :  { %v1165_v0 = vsub.f32 1.0, %v1286_v49  ;;  %v1156_v51 = vpop.permute.xlu0 %1155  ;;  %v1163_v55 = vmul.f32 %v1286_v49, %v1161_v47  ;;  %v1522_v60 = vpack.i.bf16 %v1287_v48, %v1286_v49 }
0x1875   :  { %v1154_v52 = vpop.permute.xlu1 %1153  ;;  %v1160_v53 = vsel %vm1146_vm12, %v1142_v45, %v1156_v51  ;;  %v1168_v58 = vmul.f32 0.0, %v1166_v50 }
0x1876   :  { %v1167_v56 = vmul.f32 0.0, %v1165_v0  ;;  %1223 = vperm.xlu1 %1521, %v1160_v53   ;;  %v1159_v57 = vsel %vm1145_vm13, %v1140_v46, %v1154_v52 }
0x1877   :  { %1218 = vperm.xlu0 %1520, %v1159_v57   ;;  %v1170_v24 = vadd.f32 %v1168_v58, %v1164_v61 }
0x1878   :  { %v1169_v1 = vadd.f32 %v1167_v56, %v1163_v55 }
0x187a   :  { %1523 = vperm.xlu1 %1521, %v1522_v60  }
0x187b   :  { %1244 = vperm.xlu0 %1520, %v1169_v1  }
0x187e   :  { %1249 = vperm.xlu1 %1521, %v1170_v24  }
0x1885   :  { %v1189_v63 = vpop.permute.xlu0 %1188 }
0x1886   :  { %v1174_v13 = vpop.permute.xlu1 %1173 }
0x1887   :  { %v1180_v44 = vsel %vm1171_vm14, %v1174_v13, 0.0 }
0x1889   :  { %v1207_v4 = vpop.permute.xlu0 %1206 }
0x188b   :  { %v1185_v62 = vpop.permute.xlu1 %1184 }
0x188c   :  { %v1191_v10 = vsel %vm1182_vm15, %v1185_v62, %v1180_v44 }
0x188e   :  { %v1178_v7 = vpop.permute.xlu0 %1177 }
0x188f   :  { %v1200_v2 = vpop.permute.xlu1 %1199  ;;  %v1181_v6 = vsel %vm1171_vm14, %v1178_v7, 0.0 }
0x1890   :  { %v1192_v11 = vsel %vm1182_vm15, %v1189_v63, %v1181_v6 }
0x1891   :  { %v1203_v16 = vsel %vm1193_vm0, %v1200_v2, %v1192_v11 }
0x1893   :  { %v1211_v5 = vpop.permute.xlu1 %1210 }
0x1894   :  { %v1214_v17 = vsel %vm1204_vm1, %v1211_v5, %v1203_v16 }
0x1897   :  { %v1196_v59 = vpop.permute.xlu1 %1195 }
0x1898   :  { %v1202_v14 = vsel %vm1193_vm0, %v1196_v59, %v1191_v10 }
0x1899   :  { %v1213_v18 = vsel %vm1204_vm1, %v1207_v4, %v1202_v14 }
0x18f5   :  { %v1224_v9 = vpop.permute.xlu1 %1223 }
0x18f6   :  { %v1219_v23 = vpop.permute.xlu0 %1218  ;;  %v1227_v12 = vsel %vm1215_vm2, %v1224_v9, %v1214_v17 }
0x18f7   :  { %v1226_v20 = vsel %vm1215_vm2, %v1219_v23, %v1213_v18 }
0x18f9   :  { %v1524_v8 = vpop.permute.xlu1 %1523 }
0x18fa   :  { %v1526_v19 = vunpack.i.h.bf16 %v1524_v8  ;;  %v1525_v3 = vunpack.i.l.bf16 %v1524_v8  ;;  %v1245_v22 = vpop.permute.xlu0 %1244 }
0x18fc   :  { %v1239_v21 = vsel %vm1228_vm3, %v1525_v3, %v1226_v20  ;;  %v1240_v25 = vsel %vm1228_vm3, %v1526_v19, %v1227_v12 }
0x18fd   :  { %v1252_v27 = vsel %vm1241_vm4, %v1245_v22, %v1239_v21  ;;  %v1250_v28 = vpop.permute.xlu1 %1249 }
0x18fe   :  { %1254 = vst [vmem:[%s1872_s7] sm:$0xff] %v1252_v27  ;;  %v1253_v29 = vsel %vm1241_vm4, %v1250_v28, %v1240_v25 }
0x18ff   :  { %1255 = vst [vmem:[%s1872_s7 + $0x8] sm:$0xff] %v1253_v29 }

</bundles_post_ra>
